<compile_context>
chip_gen: v7x
topology: tpu7x:2x2x1
jax: 0.10.0
libtpu: 0.0.40
codegen_flags: <defaults>
</compile_context>

<pallas_src>
import functools

import jax
import jax.numpy as jnp
from jax.experimental import pallas as pl
from jax.experimental.pallas import tpu as pltpu


def _round_up(x: int, m: int) -> int:
    return ((x + m - 1) // m) * m


def _sublane_multiple(dtype) -> int:
    # f32 -> 8, bf16 -> 16, int8/fp8 -> 32 (second-minor tiling granularity).
    return max(8, 32 // jnp.dtype(dtype).itemsize)


def _focal_loss_kernel(logits_ref, target_ref, loss_ref, *, alpha, gamma, eps,
                       lane_dense_out):
    # logits_ref: (TILE_N, C) float | target_ref: (TILE_N, 1) int32
    # loss_ref:   (1, TILE_N) f32 if lane_dense_out else (TILE_N, 1) f32
    x = logits_ref[...].astype(jnp.float32)
    tgt = target_ref[...]

    # Numerically stable softmax pieces.  This exp is the only transcendental
    # evaluated over the full (TILE_N, C) tile.
    m = jnp.max(x, axis=1, keepdims=True)
    e = jnp.exp(x - m)
    denom = jnp.sum(e, axis=1, keepdims=True)

    # One-hot gather of the target-class numerator (VPU compare + XLU reduce);
    # the focal transform then runs only on the (TILE_N, 1) column.
    cls_idx = jax.lax.broadcasted_iota(jnp.int32, x.shape, dimension=1)
    e_t = jnp.sum(jnp.where(cls_idx == tgt, e, 0.0), axis=1, keepdims=True)

    p_t = e_t / denom + eps                     # == softmax(x)[target] + eps

    one_minus = 1.0 - p_t
    g = float(gamma)
    if g.is_integer() and 0.0 <= g <= 8.0:      # gamma=2 default: two VPU muls, no pow
        weight = jnp.ones_like(one_minus)
        for _ in range(int(g)):
            weight = weight * one_minus
    else:
        # NOTE: like the PyTorch reference, (1 - p_t) can be slightly negative
        # (p_t = softmax + eps), so non-integer gamma may produce NaN there.
        weight = jnp.power(one_minus, g)

    loss_col = (-alpha) * weight * jnp.log(p_t)          # (TILE_N, 1)
    if lane_dense_out:
        # Sublane->lane relayout so the HBM writeback is an unmasked,
        # lane-dense (1, TILE_N) store.
        loss_ref[...] = jnp.transpose(loss_col, (1, 0))
    else:
        loss_ref[...] = loss_col


def focal_loss(logits, target, *, alpha, gamma=2.0, reduction="none", eps=1e-6,
               tile_n=None):
    """Pallas implementation of FocalLoss.forward.

    logits: (N, C) float array.  target: (N,) integer array with values in [0, C).
    """
    if logits.ndim != 2:
        raise ValueError(f"expected (N, C) logits, got {logits.shape}")
    if logits.shape[0] != target.shape[0]:
        raise ValueError(
            f"input and target shapes must be the same. Got: {logits.shape} and {target.shape}"
        )
    N, C = logits.shape

    sub = _sublane_multiple(logits.dtype)
    itemsize = jnp.dtype(logits.dtype).itemsize
    per_row = _round_up(max(C, 1), 128) * itemsize       # lane-padded VMEM row bytes
    budget = 6 * 1024 * 1024                             # per logits buffer (double-buffered)

    if tile_n is None:
        n_single = _round_up(N, sub)
        if n_single * per_row <= budget:
            # Single tile: no batch padding beyond the sublane multiple.
            tile_n = n_single
        else:
            rows_fit = max(sub, (budget // per_row) // sub * sub)
            cap = min(2048, rows_fit)
            # Prefer a 128-row multiple so the output block can be lane-dense.
            tile_n = (cap // 128) * 128 if cap >= 128 else cap
    else:
        tile_n = max(sub, _round_up(int(tile_n), sub))

    n_pad = _round_up(N, tile_n)
    # Lane-dense (1, TILE_N) out block is legal when its minor dim is a
    # multiple of 128 or spans the whole (padded) batch axis.
    lane_dense_out = (tile_n % 128 == 0) or (tile_n == n_pad)

    target2d = target.astype(jnp.int32).reshape(N, 1)
    if n_pad != N:
        # Zero padding is benign: softmax of a zero row is finite and the padded
        # rows are sliced off before any reduction.
        # TODO(synk): the jnp.pad is one extra XLA pass over the logits when
        # N % tile_n != 0; a ragged-tail second call would avoid it.
        logits_in = jnp.pad(logits, ((0, n_pad - N), (0, 0)))
        target_in = jnp.pad(target2d, ((0, n_pad - N), (0, 0)))
    else:
        logits_in, target_in = logits, target2d

    kernel = functools.partial(
        _focal_loss_kernel, alpha=float(alpha), gamma=float(gamma),
        eps=float(eps), lane_dense_out=lane_dense_out)

    cost = pl.CostEstimate(
        flops=6 * N * C + 12 * N,
        transcendentals=N * C + 2 * N,          # exp over (N, C) + log/pow on (N, 1)
        bytes_accessed=N * C * itemsize + N * 4 + N * 4,
    )

    num_tiles = n_pad // tile_n
    if lane_dense_out:
        out_shape = jax.ShapeDtypeStruct((1, n_pad), jnp.float32)
        out_spec = pl.BlockSpec((1, tile_n), lambda i: (0, i))
    else:
        out_shape = jax.ShapeDtypeStruct((n_pad, 1), jnp.float32)
        out_spec = pl.BlockSpec((tile_n, 1), lambda i: (i, 0))

    loss2d = pl.pallas_call(
        kernel,
        out_shape=out_shape,
        grid=(num_tiles,),
        in_specs=[
            pl.BlockSpec((tile_n, C), lambda i: (i, 0)),
            pl.BlockSpec((tile_n, 1), lambda i: (i, 0)),
        ],
        out_specs=out_spec,
        compiler_params=pltpu.CompilerParams(
            # Rows are independent -> megacore-parallel on v7x, no-op elsewhere.
            dimension_semantics=("parallel",),
            vmem_limit_bytes=32 * 1024 * 1024,
        ),
        cost_estimate=cost,
    )(logits_in, target_in)

    loss_tmp = loss2d[0, :N] if lane_dense_out else loss2d[:N, 0]

    if reduction == "none":
        return loss_tmp
    elif reduction == "mean":
        return jnp.mean(loss_tmp)
    elif reduction == "sum":
        return jnp.sum(loss_tmp)
    else:
        raise NotImplementedError(f"Invalid reduction mode: {reduction}")


def _focal_loss_ref(logits, target, *, alpha, gamma=2.0, reduction="none", eps=1e-6):
    """Pure-JAX reference mirroring the PyTorch module."""
    p = jax.nn.softmax(logits, axis=1) + eps
    one_hot = jax.nn.one_hot(target, logits.shape[1], dtype=logits.dtype)
    weight = jnp.power(1.0 - p, gamma)
    focal = -alpha * weight * jnp.log(p)
    loss_tmp = jnp.sum(one_hot * focal, axis=1)
    if reduction == "none":
        return loss_tmp
    if reduction == "mean":
        return jnp.mean(loss_tmp)
    if reduction == "sum":
        return jnp.sum(loss_tmp)
    raise NotImplementedError(reduction)


if __name__ == "__main__":
    key = jax.random.PRNGKey(0)
    k1, k2, k3, k4, k5, k6 = jax.random.split(key, 6)

    # 1) Module docstring example: N=16, C=2, gamma=2 fast path, single
    #    lane-dense tile (exercises the in-kernel transpose).
    N, C = 16, 2
    logits = jax.random.normal(k1, (N, C), dtype=jnp.float32)
    target = jax.random.randint(k2, (N,), 0, C, dtype=jnp.int32)
    out_none = focal_loss(logits, target, alpha=0.5, gamma=2.0, reduction="none")
    out_mean = focal_loss(logits, target, alpha=0.5, gamma=2.0, reduction="mean")
    jax.block_until_ready((out_none, out_mean))
    ref_none = _focal_loss_ref(logits, target, alpha=0.5, gamma=2.0, reduction="none")
    ref_mean = _focal_loss_ref(logits, target, alpha=0.5, gamma=2.0, reduction="mean")
    assert out_none.shape == (N,)
    assert jnp.allclose(out_none, ref_none, atol=1e-5, rtol=1e-5)
    assert jnp.allclose(out_mean, ref_mean, atol=1e-5, rtol=1e-5)

    # 2) Multi-tile lane-dense path: grid > 1, batch padding, 'mean' reduction.
    N2, C2 = 300, 8
    logits2 = jax.random.normal(k3, (N2, C2), dtype=jnp.float32)
    target2 = jax.random.randint(k4, (N2,), 0, C2, dtype=jnp.int32)
    out2 = focal_loss(logits2, target2, alpha=0.25, gamma=2.0, reduction="mean",
                      tile_n=128)
    jax.block_until_ready(out2)
    ref2 = _focal_loss_ref(logits2, target2, alpha=0.25, gamma=2.0, reduction="mean")
    assert jnp.allclose(out2, ref2, atol=1e-5, rtol=1e-5)

    # 3) Column-output fallback path: user-forced sub-128 tile, non-integer
    #    gamma (generic pow), 'sum' reduction.
    N3, C3 = 40, 5
    logits3 = jax.random.normal(k5, (N3, C3), dtype=jnp.float32)
    target3 = jax.random.randint(k6, (N3,), 0, C3, dtype=jnp.int32)
    out3 = focal_loss(logits3, target3, alpha=0.25, gamma=1.5, reduction="sum",
                      tile_n=16)
    jax.block_until_ready(out3)
    ref3 = _focal_loss_ref(logits3, target3, alpha=0.25, gamma=1.5, reduction="sum")
    assert jnp.allclose(out3, ref3, atol=1e-5, rtol=1e-5)

    print("KERNEL_OK")
</pallas_src>

<mosaic_0001>
module attributes {stable_mosaic.version = 11 : i64} {
  func.func @_focal_loss_kernel(%arg0: i32, %arg1: memref<16x2xf32, #tpu.memory_space<vmem>>, %arg2: memref<16x1xi32, #tpu.memory_space<vmem>>, %arg3: memref<1x16xf32, #tpu.memory_space<vmem>>) attributes {dimension_semantics = [#tpu.dimension_semantics<parallel>], iteration_bounds = array<i64: 1>, scalar_prefetch = 0 : i64, scratch_operands = 0 : i64, tpu.core_type = #tpu.core_type<tc>, window_params = [{transform_indices = @transform_0, window_bounds = array<i64: 16, 2>}, {transform_indices = @transform_1, window_bounds = array<i64: 16, 1>}, {transform_indices = @transform_2, window_bounds = array<i64: 1, 16>}]} {
    %c0 = arith.constant 0 : index
    %c0_0 = arith.constant 0 : index
    %0 = vector.load %arg1[%c0, %c0_0] : memref<16x2xf32, #tpu.memory_space<vmem>>, vector<16x2xf32>
    %c0_1 = arith.constant 0 : index
    %c0_2 = arith.constant 0 : index
    %1 = vector.load %arg2[%c0_1, %c0_2] : memref<16x1xi32, #tpu.memory_space<vmem>>, vector<16x1xi32>
    %cst = arith.constant dense<0xFF800000> : vector<16xf32>
    %2 = vector.multi_reduction <maximumf>, %0, %cst [1] : vector<16x2xf32> to vector<16xf32>
    %3 = vector.shape_cast %2 : vector<16xf32> to vector<16x1xf32>
    %4 = vector.broadcast %3 : vector<16x1xf32> to vector<16x2xf32>
    %5 = arith.subf %0, %4 : vector<16x2xf32>
    %6 = math.exp %5 : vector<16x2xf32>
    %cst_3 = arith.constant dense<0.000000e+00> : vector<16xf32>
    %7 = vector.multi_reduction <add>, %6, %cst_3 [1] : vector<16x2xf32> to vector<16xf32>
    %8 = vector.shape_cast %7 : vector<16xf32> to vector<16x1xf32>
    %9 = tpu.iota {dimensions = array<i32: 1>} : vector<16x2xi32>
    %10 = vector.broadcast %1 : vector<16x1xi32> to vector<16x2xi32>
    %11 = arith.cmpi eq, %9, %10 : vector<16x2xi32>
    %cst_4 = arith.constant 0.000000e+00 : f32
    %12 = vector.broadcast %cst_4 : f32 to vector<16x2xf32>
    %13 = arith.select %11, %6, %12 : vector<16x2xi1>, vector<16x2xf32>
    %cst_5 = arith.constant dense<0.000000e+00> : vector<16xf32>
    %14 = vector.multi_reduction <add>, %13, %cst_5 [1] : vector<16x2xf32> to vector<16xf32>
    %15 = vector.shape_cast %14 : vector<16xf32> to vector<16x1xf32>
    %16 = arith.divf %15, %8 : vector<16x1xf32>
    %cst_6 = arith.constant 9.99999997E-7 : f32
    %17 = vector.broadcast %cst_6 : f32 to vector<16x1xf32>
    %18 = arith.addf %16, %17 : vector<16x1xf32>
    %cst_7 = arith.constant 1.000000e+00 : f32
    %19 = vector.broadcast %cst_7 : f32 to vector<16x1xf32>
    %20 = arith.subf %19, %18 : vector<16x1xf32>
    %cst_8 = arith.constant 1.000000e+00 : f32
    %21 = vector.broadcast %cst_8 : f32 to vector<16x1xf32>
    %22 = arith.mulf %21, %20 : vector<16x1xf32>
    %23 = arith.mulf %22, %20 : vector<16x1xf32>
    %cst_9 = arith.constant -5.000000e-01 : f32
    %24 = vector.broadcast %cst_9 : f32 to vector<16x1xf32>
    %25 = arith.mulf %24, %23 : vector<16x1xf32>
    %26 = math.log %18 : vector<16x1xf32>
    %27 = arith.mulf %25, %26 : vector<16x1xf32>
    %28 = tpu.transpose %27, [1, 0] : vector<16x1xf32> -> vector<1x16xf32>
    %c0_10 = arith.constant 0 : index
    %c0_11 = arith.constant 0 : index
    %29 = vector.load %arg3[%c0_10, %c0_11] : memref<1x16xf32, #tpu.memory_space<vmem>>, vector<1x16xf32>
    tpu.vector_store %arg3[%c0_10, %c0_11], %28 {strides = array<i32>} : memref<1x16xf32, #tpu.memory_space<vmem>>, vector<1x16xf32>,
    return
  }
  func.func @transform_0(%arg0: i32) -> (i32, i32) {
    %c0_i32 = arith.constant 0 : i32
    %c0_i32_0 = arith.constant 0 : i32
    return %arg0, %c0_i32 : i32, i32
  }
  func.func @transform_1(%arg0: i32) -> (i32, i32) {
    %c0_i32 = arith.constant 0 : i32
    %c0_i32_0 = arith.constant 0 : i32
    return %arg0, %c0_i32 : i32, i32
  }
  func.func @transform_2(%arg0: i32) -> (i32, i32) {
    %c0_i32 = arith.constant 0 : i32
    %c0_i32_0 = arith.constant 0 : i32
    return %c0_i32, %arg0 : i32, i32
  }
}

</mosaic_0001>

<bundles_post_ra>
// kernel: tpu_custom_call.1
= control target key start
LH: loop header
LB: loop body
LE: loop exit
PB: predicated region body
PF: predicated region fallthrough
CT: control target
= control target key end

     0   :  { %vm16_vm0 = vcmask 15360   ;;  %v160_v4 = vmov 0   ;;  %s207_s0 = inlined_call_operand.vmem [shape: f32[16,2], index: 0, kind: input, shape index: {}]   ;;  %s208_s1 = inlined_call_operand.vmem [shape: s32[16,1], index: 1, kind: input, shape index: {}]   ;;  %s209_s2 = inlined_call_operand.hbm [shape: f32[1,16], index: 2, kind: output, shape index: {}]  }
   0x1   :  { %v12_v0 = vld [vmem:[%s207_s0] sm:$0xff]  ;;  %v13_v1 = vld [vmem:[%s207_s0 + $0x8] sm:$0xff]  ;;  %122 = vset.pattern.permute.xlu1 %v160_v4 }
   0x2   :  { %v14_v2 = vld [vmem:[%s208_s1] sm:$0xff]  ;;  %v17_v3 = vsel %vm16_vm0, %v12_v0, -inf }
   0x3   :  { %7 = vsyncpa [#allocation3], 0  ;;  %18 = vmax.xlane.f32.xlu0 %v17_v3  ;;  %38 = vperm.xlu1 %122, %v14_v2   ;;  %v20_v5 = vsel %vm16_vm0, %v13_v1, -inf  ;;  %v15_v6 = vld [vmem:[%s208_s1 + $0x8] sm:$0xff]  ;;  %v35_v12 = vlaneseq  ;;  %s161_s0 = smov [#allocation2]   ;;  %vm103_vm3 = vcmask 122880  }
   0x4   :  { %s111_s1 = sshll.u32 %s161_s0, 4  ;;  %s112_s1 = int_to_ptr.vmem [resolvable:$true] %s111_s1 }
   0x5   :  { %v36_v15 = vand.u32 127, %v35_v12  ;;  %s136_s17 = scalar_lea.vmem %s112_s1, 16  ;;  %s140_s18 = scalar_lea.vmem %s112_s1, 32 }
   0x6   :  { %p137_p0 = scmp.ne.s32.totalorder %s112_s1, %s136_s17  ;;  %p141_p1 = scmp.lt.s32.totalorder %s112_s1, %s112_s1 }
   0x7   :  { %21 = vmax.xlane.f32.xlu0 %v20_v5  ;;  %41 = vperm.xlu1 %122, %v15_v6   ;;  %p142_p2 = scmp.lt.s32.totalorder %s140_s18, %s136_s17 }
   0x9   :  { %p143_p3 = por %p142_p2, %p141_p1 }
   0xb   :  { %p144_p4 = pnand %p143_p3, %p137_p0 }
  0x82   :  { %v39_v14 = vpop.permute.xlu1 %38 }
  0x83   :  { %vm43_vm1 = vcmp.eq.s32.totalorder %v36_v15, %v39_v14 }
  0x86   :  { %v42_v17 = vpop.permute.xlu1 %41 }
  0x87   :  { %vm44_vm2 = vcmp.eq.s32.totalorder %v36_v15, %v42_v17 }
  0x90   :  { %v19_v7 = vpop.xlane.xlu0 %18 }
  0x91   :  { %v23_v8 = vsub.f32 %v12_v0, %v19_v7 }
  0x93   :  { %v25_v9 = vmul.f32 1.442695, %v23_v8 }
  0x94   :  { %v22_v10 = vpop.xlane.xlu0 %21 }
  0x95   :  { %124 = vpow2.f32 %v25_v9  ;;  %v24_v11 = vsub.f32 %v13_v1, %v22_v10 }
  0x97   :  { %v27_v13 = vmul.f32 1.442695, %v24_v11 }
  0x99   :  { %126 = vpow2.f32 %v27_v13 }
  0x9f   :  { %v125_v16 = vpop.eup %124 }
  0xa0   :  { %v29_v18 = vsel %vm16_vm0, %v125_v16, 0.0  ;;  %v45_v19 = vsel %vm43_vm1, %v125_v16, 0.0 }
  0xa1   :  { %30 = vadd.xlane.f32.xlu0 %v29_v18  ;;  %v47_v21 = vsel %vm16_vm0, %v45_v19, 0.0 }
  0xa3   :  { %v127_v20 = vpop.eup %126 }
  0xa4   :  { %v32_v22 = vsel %vm16_vm0, %v127_v20, 0.0  ;;  %v46_v23 = vsel %vm44_vm2, %v127_v20, 0.0 }
  0xa5   :  { %48 = vadd.xlane.f32.xlu0 %v47_v21  ;;  %33 = vadd.xlane.f32.xlu1 %v32_v22  ;;  %v50_v24 = vsel %vm16_vm0, %v46_v23, 0.0 }
  0xa9   :  { %51 = vadd.xlane.f32.xlu0 %v50_v24 }
 0x12e   :  { %v31_v25 = vpop.xlane.xlu0 %30 }
 0x12f   :  { %128 = vrcp.f32 %v31_v25 }
 0x132   :  { %v34_v26 = vpop.xlane.xlu1 %33  ;;  %v49_v27 = vpop.xlane.xlu0 %48 }
 0x133   :  { %130 = vrcp.f32 %v34_v26 }
 0x136   :  { %v52_v32 = vpop.xlane.xlu0 %51 }
 0x139   :  { %v129_v28 = vpop.eup %128 }
 0x13a   :  { %v54_v29 = vmul.f32 %v129_v28, %v49_v27 }
 0x13c   :  { %v57_v30 = vadd.f32 1e-06, %v54_v29 }
 0x13d   :  { %v131_v31 = vpop.eup %130 }
 0x13e   :  { %132 = vlog2.f32 %v57_v30  ;;  %v56_v33 = vmul.f32 %v131_v31, %v52_v32  ;;  %v59_v35 = vsub.f32 1.0, %v57_v30 }
 0x140   :  { %v58_v34 = vadd.f32 1e-06, %v56_v33  ;;  %v61_v36 = vmul.f32 %v59_v35, %v59_v35 }
 0x142   :  { %134 = vlog2.f32 %v58_v34  ;;  %v60_v37 = vsub.f32 1.0, %v58_v34  ;;  %v63_v40 = vmul.f32 -0.5, %v61_v36 }
 0x144   :  { %v62_v39 = vmul.f32 %v60_v37, %v60_v37 }
 0x146   :  { %v64_v44 = vmul.f32 -0.5, %v62_v39 }
 0x148   :  { %v133_v38 = vpop.eup %132 }
 0x149   :  { %v66_v41 = vmul.f32 0.6931472, %v133_v38 }
 0x14b   :  { %v69_v42 = vmul.f32 %v66_v41, %v63_v40 }
 0x14c   :  { %v135_v43 = vpop.eup %134 }
 0x14d   :  { %v68_v45 = vmul.f32 0.6931472, %v135_v43  ;;  %71 = vxpose.xlu0.b32.start [1/2] (short) (narrow) %v69_v42, 8 }
 0x14f   :  { %v70_v46 = vmul.f32 %v68_v45, %v64_v44 }
 0x151   :  { %72 = vxpose.xlu0.b32.end [2/2] (short) (narrow) %v70_v46, 8 }
 0x17a   :  { %123 = vset.pattern.permute.xlu0 %v160_v4 }
 0x1cd   :  { %v87_v47 = vpop.trf.xlu0 }
 0x1ce   :  { %104 = vst.msk [vmem:[#allocation2] sm:$0x1] %vm103_vm3, %v87_v47 }
 0x1cf   :  { %147 = shalt.err (!%p144_p4)
}
 0x1d0   :  { %s148_s21 = scalar_lea.hbm %s209_s2, 16 }
 0x1d1   :  { %p149_p5 = scmp.ne.s32.totalorder %s209_s2, %s148_s21  ;;  %p152_p6 = scmp.lt.u32.totalorder %s148_s21, %s209_s2 }
 0x1d3   :  { %p154_p7 = pnand %p152_p6, %p149_p5 }
 0x1d5   :  { %157 = shalt.err (!%p154_p7)
}
 0x1d6   :  { %114 = dma.vmem_to_hbm [thread:$0]  %s112_s1, 16, %s209_s2, [#allocation3]  }
 0x1d7   :  { %158 = dma.done.wait [#allocation3], 16  }
 0x1d8   :  { %159 = vsyncadd [#allocation3], 4294967280 }
 0x1d9   :  { %118 = vsyncpa [#allocation3], 1 }

</bundles_post_ra>
